<compile_context>
chip_gen: v7x
topology: tpu7x:2x2x1
jax: 0.10.0
libtpu: 0.0.40
codegen_flags: <defaults>
</compile_context>

<pallas_src>
import functools

import jax
import jax.numpy as jnp
from jax import lax
from jax.experimental import pallas as pl
from jax.experimental.pallas import tpu as pltpu


def _round_up(n, m):
    return ((n + m - 1) // m) * m


def _cdiv(a, b):
    return (a + b - 1) // b


def _mlp_kernel(x_ref, p_ref, o_ref, *, n_in, h1, h2, n_out, n_out_pad):
    """x_ref: (n_in, TB)   p_ref: (h1+h2+n_out_pad, 128) slab   o_ref: (n_out, TB)."""
    hp = lax.Precision.HIGHEST
    x = x_ref[...]                                     # (n_in, TB), batch on lanes

    # ---- layer 1: W1 (h1, n_in) @ x + b1.  K = n_in (=2): two VPU broadcast FMAs ----
    w1 = p_ref[0:h1, 0:n_in]                           # (h1, n_in)
    acc = p_ref[0:h1, n_in:n_in + 1]                   # b1 as (h1, 1), lane-broadcast
    for k in range(n_in):
        acc = acc + w1[:, k:k + 1] * x[k:k + 1, :]
    a = jnp.tanh(acc)                                  # (h1, TB), tanh on EUP

    # ---- layer 2: W2 (h2, h1) @ a + b2 on the MXU (K = 16, vex slot was idle) ----
    r = h1
    w2 = p_ref[r:r + h2, 0:h1]                         # (h2, h1)
    b2 = p_ref[r:r + h2, h1:h1 + 1]                    # (h2, 1)
    a = jnp.tanh(
        jnp.dot(w2, a, preferred_element_type=jnp.float32, precision=hp) + b2
    )                                                  # (h2, TB)

    # ---- layer 3 (head) on the MXU; W3 rows are zero-padded to n_out_pad in the
    #      slab for a clean matmul shape, but only the real n_out rows are stored ----
    r = h1 + h2
    w3 = p_ref[r:r + n_out_pad, 0:h2]                  # (n_out_pad, h2), zero-padded rows
    b3 = p_ref[r:r + n_out, h2:h2 + 1]                 # (n_out, 1)
    z = jnp.dot(w3, a, preferred_element_type=jnp.float32, precision=hp)
    o_ref[...] = z[0:n_out, :] + b3                    # (n_out, TB), lane-dense store


def pack_params(params):
    """Pack all PyTorch-layout params (W: (out,in), b: (out,)) into ONE (rows, 128)
    f32 slab.  Call once per parameter update and pass the result to the forward."""
    w1, b1 = params["w1"], params["b1"]
    w2, b2 = params["w2"], params["b2"]
    w3, b3 = params["w3"], params["b3"]
    h1, n_in = w1.shape
    h2 = w2.shape[0]
    n_out = w3.shape[0]
    n_out_pad = _round_up(max(n_out, 8), 8)
    rows = h1 + h2 + n_out_pad
    slab = jnp.zeros((rows, 128), jnp.float32)
    slab = slab.at[0:h1, 0:n_in].set(w1.astype(jnp.float32))
    slab = slab.at[0:h1, n_in].set(b1.astype(jnp.float32))
    slab = slab.at[h1:h1 + h2, 0:h1].set(w2.astype(jnp.float32))
    slab = slab.at[h1:h1 + h2, h1].set(b2.astype(jnp.float32))
    r = h1 + h2
    slab = slab.at[r:r + n_out, 0:h2].set(w3.astype(jnp.float32))
    slab = slab.at[r:r + n_out, h2].set(b3.astype(jnp.float32))
    return slab


@functools.partial(jax.jit, static_argnames=("n_in", "h1", "h2", "n_out", "max_tb"))
def reinforce_net_forward(x, slab, *, n_in=2, h1=16, h2=16, n_out=2, max_tb=2048):
    """x: (B, n_input) f32 -> (B, n_output) f32, same semantics as the PyTorch module.

    slab: pre-packed parameter slab from pack_params(params).
    max_tb: lane-dense batch tile (multiple of 128).  At TB=2048 the per-step
    double-buffered footprint is ~50 KiB, far under the scoped VMEM limit on
    v5e / v6e / v7x, so the same setting is safe everywhere.
    """
    B = x.shape[0]
    assert x.shape[1] == n_in
    n_out_pad = _round_up(max(n_out, 8), 8)
    rows = h1 + h2 + n_out_pad
    assert slab.shape == (rows, 128)

    # Batch tiling: large lane-dense tiles (amortize per-grid-step overhead), but
    # keep >= 2 tiles when the batch spans >= 2 lane tiles so the "parallel" grid
    # axis can shard across both TensorCores on v7x.
    B_up = _round_up(B, 128)
    n_tiles = _cdiv(B_up, max_tb)
    if B_up >= 256:
        n_tiles = max(n_tiles, 2)
    TB = _round_up(_cdiv(B_up, n_tiles), 128)
    B_pad = _round_up(B_up, TB)
    grid = (B_pad // TB,)

    # Batch goes on the lane axis: feed x^T, zero-padded to B_pad columns.
    xT = jnp.pad(x.astype(jnp.float32).T, ((0, 0), (0, B_pad - B)))

    kernel = functools.partial(
        _mlp_kernel, n_in=n_in, h1=h1, h2=h2, n_out=n_out, n_out_pad=n_out_pad
    )

    flops = 2 * B_pad * (n_in * h1 + h1 * h2 + h2 * n_out_pad)
    bytes_accessed = (xT.size + slab.size + n_out * B_pad) * 4

    outT = pl.pallas_call(
        kernel,
        out_shape=jax.ShapeDtypeStruct((n_out, B_pad), jnp.float32),
        grid=grid,
        in_specs=[
            # x^T streams over the batch grid (lane-dense blocks).
            pl.BlockSpec((n_in, TB), lambda i: (0, i)),
            # Parameter slab: constant index_map -> fetched once, stays resident.
            pl.BlockSpec((rows, 128), lambda i: (0, 0)),
        ],
        out_specs=pl.BlockSpec((n_out, TB), lambda i: (0, i)),
        compiler_params=pltpu.CompilerParams(
            dimension_semantics=("parallel",),   # shards batch tiles across TCs on v7x
        ),
        cost_estimate=pl.CostEstimate(
            flops=flops,
            transcendentals=B_pad * (h1 + h2),
            bytes_accessed=bytes_accessed,
        ),
    )(xT, slab)

    # Drop the batch padding and return the PyTorch (B, n_output) layout.
    # TODO(synk): downstream code that can consume the (n_out, B) layout directly
    # should take outT[:, :B] instead and skip this transpose HBM pass.
    return outT[:, :B].T


def init_params(key, n_input=2, n_output=2, layers=(16, 16)):
    """Deterministic init matching PyTorch nn.Linear shapes: W (out,in), b (out,)."""
    dims = [n_input] + list(layers) + [n_output]
    params = {}
    for i in range(len(dims) - 1):
        fan_in, fan_out = dims[i], dims[i + 1]
        key, kw, kb = jax.random.split(key, 3)
        bound = 1.0 / jnp.sqrt(fan_in)
        params[f"w{i+1}"] = jax.random.uniform(
            kw, (fan_out, fan_in), jnp.float32, -bound, bound
        )
        params[f"b{i+1}"] = jax.random.uniform(
            kb, (fan_out,), jnp.float32, -bound, bound
        )
    return params


def _reference(x, p):
    hp = lax.Precision.HIGHEST
    h = jnp.tanh(jnp.dot(x, p["w1"].T, precision=hp) + p["b1"])
    h = jnp.tanh(jnp.dot(h, p["w2"].T, precision=hp) + p["b2"])
    return jnp.dot(h, p["w3"].T, precision=hp) + p["b3"]


if __name__ == "__main__":
    key = jax.random.PRNGKey(0)
    kx, kx2, kp = jax.random.split(key, 3)

    batch, n_input, n_output = 8, 2, 2
    layers = (16, 16)
    params = init_params(kp, n_input=n_input, n_output=n_output, layers=layers)
    slab = pack_params(params)  # packed once per parameter update, reused across calls

    # Small demo batch (matches the PyTorch module's tiny rollout case).
    x = jax.random.normal(kx, (batch, n_input), jnp.float32)
    out = jax.block_until_ready(
        reinforce_net_forward(
            x, slab, n_in=n_input, h1=layers[0], h2=layers[1], n_out=n_output
        )
    )
    ref = _reference(x, params)
    assert out.shape == (batch, n_output)
    assert jnp.allclose(out, ref, atol=1e-5, rtol=1e-5), "mismatch vs JAX reference"

    # Multi-tile / padded-batch sanity check (exercises the 2-tile "parallel" grid).
    x2 = jax.random.normal(kx2, (300, n_input), jnp.float32)
    out2 = jax.block_until_ready(
        reinforce_net_forward(
            x2, slab, n_in=n_input, h1=layers[0], h2=layers[1], n_out=n_output
        )
    )
    ref2 = _reference(x2, params)
    assert out2.shape == (300, n_output)
    assert jnp.allclose(out2, ref2, atol=1e-5, rtol=1e-5), "mismatch vs JAX reference"

    print("KERNEL_OK")
</pallas_src>

<mosaic_0001>
module attributes {stable_mosaic.version = 11 : i64} {
  func.func @_mlp_kernel(%arg0: i32, %arg1: memref<2x128xf32, #tpu.memory_space<vmem>>, %arg2: memref<40x128xf32, #tpu.memory_space<vmem>>, %arg3: memref<2x128xf32, #tpu.memory_space<vmem>>) attributes {dimension_semantics = [#tpu.dimension_semantics<parallel>], iteration_bounds = array<i64: 1>, scalar_prefetch = 0 : i64, scratch_operands = 0 : i64, tpu.core_type = #tpu.core_type<tc>, window_params = [{transform_indices = @transform_0, window_bounds = array<i64: 2, 128>}, {pipeline_mode = #tpu.pipeline_mode<synchronous>, transform_indices = @transform_1, window_bounds = array<i64: 40, 128>}, {transform_indices = @transform_2, window_bounds = array<i64: 2, 128>}]} {
    %c0 = arith.constant 0 : index
    %c0_0 = arith.constant 0 : index
    %0 = vector.load %arg1[%c0, %c0_0] : memref<2x128xf32, #tpu.memory_space<vmem>>, vector<2x128xf32>
    %c0_1 = arith.constant 0 : index
    %c0_2 = arith.constant 0 : index
    %1 = vector.load %arg2[%c0_1, %c0_2] : memref<40x128xf32, #tpu.memory_space<vmem>>, vector<16x2xf32>
    %c0_3 = arith.constant 0 : index
    %c2 = arith.constant 2 : index
    %2 = vector.load %arg2[%c0_3, %c2] : memref<40x128xf32, #tpu.memory_space<vmem>>, vector<16x1xf32>
    %3 = vector.extract_strided_slice %1 {offsets = [0, 0], sizes = [16, 1], strides = [1, 1]} : vector<16x2xf32> to vector<16x1xf32>
    %4 = vector.extract_strided_slice %0 {offsets = [0, 0], sizes = [1, 128], strides = [1, 1]} : vector<2x128xf32> to vector<1x128xf32>
    %5 = vector.broadcast %3 : vector<16x1xf32> to vector<16x128xf32>
    %6 = vector.broadcast %4 : vector<1x128xf32> to vector<16x128xf32>
    %7 = arith.mulf %5, %6 : vector<16x128xf32>
    %8 = vector.broadcast %2 : vector<16x1xf32> to vector<16x128xf32>
    %9 = arith.addf %8, %7 : vector<16x128xf32>
    %10 = vector.extract_strided_slice %1 {offsets = [0, 1], sizes = [16, 1], strides = [1, 1]} : vector<16x2xf32> to vector<16x1xf32>
    %11 = vector.extract_strided_slice %0 {offsets = [1, 0], sizes = [1, 128], strides = [1, 1]} : vector<2x128xf32> to vector<1x128xf32>
    %12 = vector.broadcast %10 : vector<16x1xf32> to vector<16x128xf32>
    %13 = vector.broadcast %11 : vector<1x128xf32> to vector<16x128xf32>
    %14 = arith.mulf %12, %13 : vector<16x128xf32>
    %15 = arith.addf %9, %14 : vector<16x128xf32>
    %16 = math.tanh %15 : vector<16x128xf32>
    %c16 = arith.constant 16 : index
    %c0_4 = arith.constant 0 : index
    %17 = vector.load %arg2[%c16, %c0_4] : memref<40x128xf32, #tpu.memory_space<vmem>>, vector<16x16xf32>
    %c16_5 = arith.constant 16 : index
    %c16_6 = arith.constant 16 : index
    %18 = vector.load %arg2[%c16_5, %c16_6] : memref<40x128xf32, #tpu.memory_space<vmem>>, vector<16x1xf32>
    %cst = arith.constant dense<0.000000e+00> : vector<16x128xf32>
    %19 = tpu.matmul %17, %16, %cst {dimension_numbers = #tpu.dot_dimension_numbers<[1], [0], [0], [1], [0, 0, 1, 1], [], []>, precision = #tpu.contract_precision<fp32>} : vector<16x16xf32>, vector<16x128xf32>, vector<16x128xf32> -> vector<16x128xf32>
    %20 = vector.broadcast %18 : vector<16x1xf32> to vector<16x128xf32>
    %21 = arith.addf %19, %20 : vector<16x128xf32>
    %22 = math.tanh %21 : vector<16x128xf32>
    %c32 = arith.constant 32 : index
    %c0_7 = arith.constant 0 : index
    %23 = vector.load %arg2[%c32, %c0_7] : memref<40x128xf32, #tpu.memory_space<vmem>>, vector<8x16xf32>
    %c32_8 = arith.constant 32 : index
    %c16_9 = arith.constant 16 : index
    %24 = vector.load %arg2[%c32_8, %c16_9] : memref<40x128xf32, #tpu.memory_space<vmem>>, vector<2x1xf32>
    %cst_10 = arith.constant dense<0.000000e+00> : vector<8x128xf32>
    %25 = tpu.matmul %23, %22, %cst_10 {dimension_numbers = #tpu.dot_dimension_numbers<[1], [0], [0], [1], [0, 0, 1, 1], [], []>, precision = #tpu.contract_precision<fp32>} : vector<8x16xf32>, vector<16x128xf32>, vector<8x128xf32> -> vector<8x128xf32>
    %26 = vector.extract_strided_slice %25 {offsets = [0, 0], sizes = [2, 128], strides = [1, 1]} : vector<8x128xf32> to vector<2x128xf32>
    %27 = vector.broadcast %24 : vector<2x1xf32> to vector<2x128xf32>
    %28 = arith.addf %26, %27 : vector<2x128xf32>
    %c0_11 = arith.constant 0 : index
    %c0_12 = arith.constant 0 : index
    %29 = vector.load %arg3[%c0_11, %c0_12] : memref<2x128xf32, #tpu.memory_space<vmem>>, vector<2x128xf32>
    tpu.vector_store %arg3[%c0_11, %c0_12], %28 {strides = array<i32>} : memref<2x128xf32, #tpu.memory_space<vmem>>, vector<2x128xf32>,
    return
  }
  func.func @transform_0(%arg0: i32) -> (i32, i32) {
    %c0_i32 = arith.constant 0 : i32
    %c0_i32_0 = arith.constant 0 : i32
    return %c0_i32, %arg0 : i32, i32
  }
  func.func @transform_1(%arg0: i32) -> (i32, i32) {
    %c0_i32 = arith.constant 0 : i32
    %c0_i32_0 = arith.constant 0 : i32
    %c0_i32_1 = arith.constant 0 : i32
    return %c0_i32, %c0_i32_0 : i32, i32
  }
  func.func @transform_2(%arg0: i32) -> (i32, i32) {
    %c0_i32 = arith.constant 0 : i32
    %c0_i32_0 = arith.constant 0 : i32
    return %c0_i32, %arg0 : i32, i32
  }
}

</mosaic_0001>

<bundles_post_ra>
// kernel: reinforce_net_forward.1
= control target key start
LH: loop header
LB: loop body
LE: loop exit
PB: predicated region body
PF: predicated region fallthrough
CT: control target
= control target key end

     0   :  { %7 = vsyncpa [#allocation3], 0  ;;  %s1297_s9 = smov [#allocation2]   ;;  %s1364_s0 = inlined_call_operand.vmem [shape: f32[2,128], index: 0, kind: input, shape index: {}]   ;;  %s1365_s1 = inlined_call_operand.hbm [shape: f32[40,128], index: 1, kind: input, shape index: {}]   ;;  %s1366_s2 = inlined_call_operand.vmem [shape: f32[2,128], index: 2, kind: output, shape index: {}]  }
   0x1   :  { %s15_s10 = sshll.u32 %s1297_s9, 4  ;;  %s1273_s13 = scalar_lea.hbm %s1365_s1, 640  ;;  %s16_s10 = int_to_ptr.vmem [resolvable:$true] %s15_s10 }
   0x2   :  { %p1274_p0 = scmp.ne.s32.totalorder %s1365_s1, %s1273_s13  ;;  %p1277_p1 = scmp.lt.u32.totalorder %s1273_s13, %s1365_s1 }
   0x4   :  { %p1279_p2 = pnand %p1277_p1, %p1274_p0 }
   0x6   :  { %1282 = shalt.err (!%p1279_p2)
}
   0x7   :  { %s1283_s18 = scalar_lea.vmem %s16_s10, 640  ;;  %p1288_p4 = scmp.lt.s32.totalorder %s16_s10, %s16_s10 }
   0x8   :  { %p1284_p3 = scmp.ne.s32.totalorder %s16_s10, %s1283_s18  ;;  %p1289_p5 = scmp.lt.s32.totalorder %s1283_s18, %s1283_s18 }
   0xa   :  { %p1290_p6 = por %p1289_p5, %p1288_p4 }
   0xc   :  { %p1291_p7 = pnand %p1290_p6, %p1284_p3 }
   0xe   :  { %1294 = shalt.err (!%p1291_p7)
}
   0xf   :  { %s1298_s19 = smov 128   ;;  %s1299_s20 = smov 8  }
  0x10   :  { %21 = dma.hbm_to_vmem [thread:$0]  %s1365_s1, 640, %s16_s10, [#allocation3], %s1298_s19, %s1298_s19, %s1299_s20  }
  0x11   :  { %1295 = dma.done.wait [#allocation3], 640  }
  0x12   :  { %1296 = vsyncadd [#allocation3], 4294966656  ;;  %v1300_v0 = vmov 2   ;;  %v1301_v1 = vmov 0   ;;  %v26_v2 = vld [vmem:[#allocation2] sm:$0xff]  ;;  %v27_v3 = vld [vmem:[#allocation2 + $0x8] sm:$0xff]  ;;  %v38_v15 = vlaneseq }
  0x13   :  { %1260 = vset.pattern.permute.xlu1 %v1300_v0  ;;  %1259 = vset.pattern.permute.xlu0 %v1301_v1  ;;  %v1302_v4 = vmov 1   ;;  %v72_v5 = vld [vmem:[#allocation2 + $0x10] sm:$0xff]  ;;  %vm84_vm0 = vcmask 130048   ;;  %v73_v12 = vld [vmem:[#allocation2 + $0x18] sm:$0xff]  ;;  %v1303_v13 = vmov 16   ;;  %v1304_v58 = vmov 0.0|0.0  }
  0x14   :  { %45 = vperm.xlu1 %1260, %v26_v2   ;;  %30 = vperm.xlu0 %1259, %v26_v2   ;;  %v85_v6 = vsel %vm84_vm0, %v72_v5, 0  ;;  %v594_v14 = vld [vmem:[#allocation2 + $0x20] sm:$0x3]  ;;  %v39_v16 = vshrl.u32 %v38_v15, 7  ;;  %v87_v34 = vsel %vm84_vm0, %v73_v12, 0  ;;  %vm1305_vm1 = vmmov 0  }
  0x15   :  { %v1335_v7 = vand.u32 4294901760, %v85_v6  ;;  %v25_v18 = vld [vmem:[%s1364_s0] sm:$0x3]  ;;  %v166_v37 = vand.u32 4294901760, %v87_v34  ;;  %1219 = vmatprep.subr.bf16.mxu1 %v1304_v58  ;;  %v1306_v59 = vmov 0.0  }
  0x16   :  { %v40_v17 = vsub.s32 0, %v39_v16  ;;  %v64_v22 = vsub.s32 1, %v39_v16  ;;  %1157 = vmatprep.mubr.msk.f32.mxu1 %vm1305_vm1, %v1306_v59  ;;  %v593_v60 = vld [vmem:[#allocation2 + $0x20] sm:$0xff] }
  0x17   :  { %v1338_v8 = vsub.f32 %v85_v6, %v1335_v7  ;;  %v167_v38 = vsub.f32 %v87_v34, %v166_v37  ;;  %v596_v62 = vsel %vm84_vm0, %v593_v60, 0 }
  0x18   :  { %49 = vperm.xlu1 %1260, %v27_v3   ;;  %35 = vperm.xlu0 %1259, %v27_v3   ;;  %v41_v21 = vrot.slane %v25_v18, %v40_v17  ;;  %v65_v27 = vrot.slane %v25_v18, %v64_v22 }
  0x19   :  { %v158_v9 = vand.u32 4294901760, %v1338_v8  ;;  %v168_v39 = vand.u32 4294901760, %v167_v38 }
  0x1b   :  { %v159_v10 = vsub.f32 %v1338_v8, %v158_v9  ;;  %v169_v44 = vsub.f32 %v167_v38, %v168_v39 }
  0x1c   :  { %1262 = vset.pattern.permute.xlu1 %v1302_v4  ;;  %1261 = vset.pattern.permute.xlu0 %v1302_v4  ;;  %v665_v4 = vand.u32 4294901760, %v596_v62 }
  0x1d   :  { %59 = vperm.xlu1 %1262, %v27_v3   ;;  %55 = vperm.xlu0 %1261, %v26_v2   ;;  %v160_v11 = vand.u32 4294901760, %v159_v10  ;;  %v170_v49 = vand.u32 4294901760, %v169_v44 }
  0x1f   :  { %1115 = vmatprep.mubr.f32.mxu0 %v160_v11 }
  0x21   :  { %1264 = vset.pattern.permute.xlu0 %v1303_v13  ;;  %1263 = vset.pattern.permute.xlu1 %v1303_v13 }
  0x22   :  { %81 = vperm.xlu0 %1264, %v73_v12   ;;  %76 = vperm.xlu1 %1263, %v72_v5   ;;  %v666_v5 = vsub.f32 %v596_v62, %v665_v4 }
  0x24   :  { %v667_v6 = vand.u32 4294901760, %v666_v5 }
  0x26   :  { %1059 = vperm.xlu1 %1263, %v594_v14   ;;  %v668_v10 = vsub.f32 %v666_v5, %v667_v6 }
  0x28   :  { %v669_v15 = vand.u32 4294901760, %v668_v10 }
  0x93   :  { %v46_v19 = vpop.permute.xlu1 %45  ;;  %v31_v20 = vpop.permute.xlu0 %30 }
  0x94   :  { %v42_v25 = vmul.f32 %v41_v21, %v31_v20 }
  0x96   :  { %v52_v30 = vadd.f32 %v46_v19, %v42_v25 }
  0x97   :  { %v50_v23 = vpop.permute.xlu1 %49  ;;  %v36_v24 = vpop.permute.xlu0 %35 }
  0x98   :  { %v43_v26 = vmul.f32 %v41_v21, %v36_v24 }
  0x9a   :  { %v53_v31 = vadd.f32 %v50_v23, %v43_v26 }
  0x9c   :  { %v60_v28 = vpop.permute.xlu1 %59  ;;  %v56_v29 = vpop.permute.xlu0 %55 }
  0x9d   :  { %v67_v32 = vmul.f32 %v65_v27, %v60_v28  ;;  %v66_v33 = vmul.f32 %v65_v27, %v56_v29 }
  0x9f   :  { %v69_v35 = vadd.f32 %v67_v32, %v53_v31  ;;  %v68_v36 = vadd.f32 %v66_v33, %v52_v30 }
  0xa1   :  { %1265 = vtanh.f32 %v69_v35  ;;  %v82_v61 = vpop.permute.xlu0 %81  ;;  %v77_v1 = vpop.permute.xlu1 %76 }
  0xa2   :  { %1267 = vtanh.f32 %v68_v36 }
  0xab   :  { %v1266_v40 = vpop.eup %1265 }
  0xac   :  { %v1268_v41 = vpop.eup %1267  ;;  %v93_v42 = vand.u32 4294901760, %v1266_v40 }
  0xad   :  { %v90_v43 = vand.u32 4294901760, %v1268_v41 }
  0xae   :  { %v185_v45 = vsub.f32 %v1266_v40, %v93_v42 }
  0xaf   :  { %v1195_v46 = vpack.c.bf16 %v93_v42, %v90_v43  ;;  %v178_v47 = vsub.f32 %v1268_v41, %v90_v43  ;;  %v1060_v42 = vpop.permute.xlu1 %1059 }
  0xb0   :  { %v186_v48 = vand.u32 4294901760, %v185_v45 }
  0xb1   :  { %1196 = vmatprep.subr.bf16.mxu0 %v1195_v46  ;;  %v179_v50 = vand.u32 4294901760, %v178_v47  ;;  %v1203_v56 = vpack.c.bf16 %v185_v45, %v178_v47 }
  0xb2   :  { %1198 = vmatpush3.bf16.msra.mxu0 %v1195_v46  ;;  %v187_v51 = vsub.f32 %v185_v45, %v186_v48 }
  0xb3   :  { %v180_v52 = vsub.f32 %v178_v47, %v179_v50  ;;  %v1211_v57 = vpack.c.bf16 %v186_v48, %v179_v50 }
  0xb4   :  { %v188_v53 = vand.u32 4294901760, %v187_v51 }
  0xb5   :  { %1116 = vmatmul.mubr.f32.vlgmr.msra.gmra.mrb[0].mxu0 %v170_v49  ;;  %v181_v54 = vand.u32 4294901760, %v180_v52 }
  0xb6   :  { %1122 = vmatprep.mubr.f32.mxu0 %v1335_v7 }
  0xb7   :  { %v1199_v55 = vpack.c.bf16 %v188_v53, %v181_v54 }
  0xb9   :  { %1200 = vmatprep.subr.bf16.mxu0 %v1199_v55 }
  0xba   :  { %1202 = vmatpush3.bf16.msra.mxu0 %v1199_v55 }
  0xbb   :  { %1204 = vmatprep.subr.bf16.mxu0 %v1203_v56 }
  0xbd   :  { %1123 = vmatmul.mubr.f32.vlgmr.msra.gmra.mrb[0].mxu0 %v166_v37 }
  0xbe   :  { %1206 = vmatpush3.bf16.msra.mxu0 %v1203_v56  ;;  %1129 = vmatprep.mubr.f32.mxu0 %v1338_v8 }
  0xbf   :  { %1208 = vmatprep.subr.bf16.mxu0 %v1195_v46 }
  0xc5   :  { %1130 = vmatmul.mubr.f32.vlgmr.msra.gmra.mrb[0].mxu0 %v167_v38 }
  0xc6   :  { %1210 = vmatpush3.bf16.msra.mxu0 %v1195_v46  ;;  %1136 = vmatprep.mubr.f32.mxu0 %v158_v9 }
  0xc7   :  { %1212 = vmatprep.subr.bf16.mxu0 %v1211_v57 }
  0xcd   :  { %1137 = vmatmul.mubr.f32.vlgmr.msra.gmra.mrb[0].mxu0 %v168_v39 }
  0xce   :  { %1214 = vmatpush3.bf16.msra.mxu0 %v1211_v57  ;;  %1143 = vmatprep.mubr.f32.mxu0 %v1335_v7 }
  0xcf   :  { %1216 = vmatprep.subr.bf16.mxu0 %v1195_v46 }
  0xd5   :  { %1144 = vmatmul.mubr.f32.vlgmr.msra.gmra.mrb[0].mxu0 %v166_v37 }
  0xd6   :  { %1218 = vmatpush3.bf16.msra.mxu0 %v1195_v46  ;;  %1150 = vmatprep.mubr.f32.mxu0 %v1335_v7 }
  0xdd   :  { %1151 = vmatmul.mubr.f32.vlgmr.msra.gmra.mrb[0].mxu0 %v166_v37 }
 0x1b0   :  { %v1152_v63 = vpop.f32.mrb[0].mxu0 }
 0x1b1   :  { %v1237_v0 = vadd.f32 %v1152_v63, %v82_v61  ;;  %v581_v2 = vpop.f32.mrb[1].mxu0 }
 0x1b2   :  { %v1238_v3 = vadd.f32 %v581_v2, %v77_v1 }
 0x1b3   :  { %1269 = vtanh.f32 %v1237_v0 }
 0x1b4   :  { %1271 = vtanh.f32 %v1238_v3 }
 0x1bd   :  { %v1270_v7 = vpop.eup %1269 }
 0x1be   :  { %v1272_v8 = vpop.eup %1271  ;;  %v602_v9 = vand.u32 4294901760, %v1270_v7 }
 0x1bf   :  { %v599_v11 = vand.u32 4294901760, %v1272_v8 }
 0x1c0   :  { %v684_v12 = vsub.f32 %v1270_v7, %v602_v9 }
 0x1c1   :  { %v1220_v13 = vpack.c.bf16 %v602_v9, %v599_v11  ;;  %v677_v14 = vsub.f32 %v1272_v8, %v599_v11 }
 0x1c2   :  { %v685_v16 = vand.u32 4294901760, %v684_v12 }
 0x1c3   :  { %1221 = vmatpush3.bf16.msra.mxu1 %v1220_v13  ;;  %v678_v17 = vand.u32 4294901760, %v677_v14  ;;  %v1226_v18 = vpack.c.bf16 %v684_v12, %v677_v14 }
 0x1c4   :  { %1222 = vmatprep.subr.bf16.mxu1 %v1304_v58  ;;  %v686_v19 = vsub.f32 %v684_v12, %v685_v16 }
 0x1c5   :  { %v679_v20 = vsub.f32 %v677_v14, %v678_v17  ;;  %v1232_v21 = vpack.c.bf16 %v685_v16, %v678_v17 }
 0x1c6   :  { %1158 = vmatmul.mubr.f32.vlgmr.msra.gmra.mrb[0].mxu1 %v669_v15  ;;  %v687_v22 = vand.u32 4294901760, %v686_v19 }
 0x1c7   :  { %v680_v23 = vand.u32 4294901760, %v679_v20  ;;  %1164 = vmatprep.mubr.msk.f32.mxu1 %vm1305_vm1, %v1306_v59 }
 0x1c9   :  { %v1223_v24 = vpack.c.bf16 %v687_v22, %v680_v23 }
 0x1cb   :  { %1224 = vmatpush3.bf16.msra.mxu1 %v1223_v24 }
 0x1cc   :  { %1225 = vmatprep.subr.bf16.mxu1 %v1304_v58 }
 0x1ce   :  { %1165 = vmatmul.mubr.f32.vlgmr.msra.gmra.mrb[2].mxu1 %v665_v4 }
 0x1cf   :  { %1227 = vmatpush3.bf16.msra.mxu1 %v1226_v18  ;;  %1171 = vmatprep.mubr.msk.f32.mxu1 %vm1305_vm1, %v1306_v59 }
 0x1d0   :  { %1228 = vmatprep.subr.bf16.mxu1 %v1304_v58 }
 0x1d2   :  { %1172 = vmatmul.mubr.f32.vlgmr.msra.gmra.mrb[4].mxu1 %v666_v5 }
 0x1d3   :  { %1230 = vmatpush3.bf16.msra.mxu1 %v1220_v13  ;;  %1178 = vmatprep.mubr.msk.f32.mxu1 %vm1305_vm1, %v1306_v59 }
 0x1d4   :  { %1231 = vmatprep.subr.bf16.mxu1 %v1304_v58 }
 0x1d6   :  { %1179 = vmatmul.mubr.f32.vlgmr.msra.gmra.mrb[6].mxu1 %v667_v6 }
 0x1d7   :  { %1233 = vmatpush3.bf16.msra.mxu1 %v1232_v21  ;;  %1185 = vmatprep.mubr.msk.f32.mxu1 %vm1305_vm1, %v1306_v59 }
 0x1d8   :  { %1234 = vmatprep.subr.bf16.mxu1 %v1304_v58 }
 0x1da   :  { %1186 = vmatmul.mubr.f32.vlgmr.msra.gmra.mrb[8].mxu1 %v665_v4 }
 0x1db   :  { %1236 = vmatpush3.bf16.msra.mxu1 %v1220_v13  ;;  %1192 = vmatprep.mubr.msk.f32.mxu1 %vm1305_vm1, %v1306_v59 }
 0x1de   :  { %1193 = vmatmul.mubr.f32.vlgmr.msra.gmra.mrb[10].mxu1 %v665_v4 }
 0x299   :  { %v671_v25 = vpop.f32.mrb[0].mxu1 }
 0x29a   :  { %v1159_v26 = vpop.f32.mrb[1].mxu1 }
 0x2a1   :  { %v752_v27 = vpop.f32.mrb[2].mxu1 }
 0x2a2   :  { %v753_v28 = vadd.f32 %v752_v27, %v671_v25  ;;  %v1166_v29 = vpop.f32.mrb[3].mxu1 }
 0x2a5   :  { %v828_v30 = vpop.f32.mrb[4].mxu1 }
 0x2a6   :  { %v829_v31 = vadd.f32 %v828_v30, %v753_v28  ;;  %v1173_v32 = vpop.f32.mrb[5].mxu1 }
 0x2a9   :  { %v903_v33 = vpop.f32.mrb[6].mxu1 }
 0x2aa   :  { %v904_v34 = vadd.f32 %v903_v33, %v829_v31  ;;  %v1180_v35 = vpop.f32.mrb[7].mxu1 }
 0x2ad   :  { %v980_v36 = vpop.f32.mrb[8].mxu1 }
 0x2ae   :  { %v981_v37 = vadd.f32 %v980_v36, %v904_v34  ;;  %v1187_v38 = vpop.f32.mrb[9].mxu1 }
 0x2b1   :  { %v1053_v39 = vpop.f32.mrb[10].mxu1 }
 0x2b2   :  { %v1054_v40 = vadd.f32 %v1053_v39, %v981_v37  ;;  %v1194_v41 = vpop.f32.mrb[11].mxu1 }
 0x2b4   :  { %v1062_v43 = vadd.f32 %v1060_v42, %v1054_v40 }
 0x2b6   :  { %1063 = vst [vmem:[%s1366_s2] sm:$0x3] %v1062_v43 }
 0x2b7   :  { %1068 = vsyncpa [#allocation3], 1 }

</bundles_post_ra>
